<compile_context>
chip_gen: v5e
topology: v5e:2x2
jax: 0.10.0
libtpu: 0.0.40
codegen_flags: <defaults>
</compile_context>

<pallas_src>
import jax
import jax.numpy as jnp
from jax.experimental import pallas as pl
from jax.experimental.pallas import tpu as pltpu

GRID_SIZE = 9
IN_DIM = GRID_SIZE * GRID_SIZE + 9   # 90
HID = 256
OUT_DIM = GRID_SIZE * GRID_SIZE      # 81


def _round_up(n, m):
    return ((n + m - 1) // m) * m


def _choose_grid(b_pad, tile_b):
    """Pick (tile_b, n_steps) for the batch grid; keep step count even for v7x."""
    tile_b = min(tile_b, b_pad)
    n = pl.cdiv(b_pad, tile_b)
    if n > 1 and n % 2 == 1:
        # odd step count -> 2/1-style imbalance across v7x's two TensorCores
        n += 1
        tile_b = _round_up(pl.cdiv(b_pad, n), 8)
        n = pl.cdiv(b_pad, tile_b)
    return tile_b, n


def tttnet_kernel(x_ref, w1_ref, b1_ref, w2_ref, b2_ref,
                  w3_ref, b3_ref, w4_ref, b4_ref, o_ref):
    # One (tile_b, 90) batch tile per grid step; weights/biases VMEM-resident
    # (constant block index -> fetched once, reused across grid steps).
    # bf16 MXU matmuls, f32 accumulation, f32 elementwise epilogue.
    x = x_ref[...].astype(jnp.bfloat16)

    h = jnp.dot(x, w1_ref[...], preferred_element_type=jnp.float32) + b1_ref[...]
    h = jnp.maximum(h, 0.0)                                   # ReLU (f32, VPU)

    h = jnp.dot(h.astype(jnp.bfloat16), w2_ref[...],
                preferred_element_type=jnp.float32) + b2_ref[...]
    h = jnp.maximum(h, 0.0)                                   # ReLU

    h = jnp.dot(h.astype(jnp.bfloat16), w3_ref[...],
                preferred_element_type=jnp.float32) + b3_ref[...]
    h = jnp.maximum(h, 0.0)                                   # ReLU

    logits = jnp.dot(h.astype(jnp.bfloat16), w4_ref[...],
                     preferred_element_type=jnp.float32) + b4_ref[...]
    # sigmoid(x) = 0.5 * (tanh(x/2) + 1): single EUP transcendental, no divide.
    o_ref[...] = 0.5 * (jnp.tanh(0.5 * logits) + 1.0)


def tttnet_forward(x, params, tile_b=1024):
    """x: (B, 90) float32 -> (B, 81) float32."""
    B = x.shape[0]
    w1, b1, w2, b2, w3, b3, w4, b4 = params   # weights bf16 (in,out); biases f32 (1,out)

    # Pad batch only to a sublane multiple (8), and only when needed (no feature pad).
    b_pad = _round_up(B, 8)
    x_in = x if b_pad == B else jnp.pad(x, ((0, b_pad - B), (0, 0)))

    tile_b, n_steps = _choose_grid(b_pad, tile_b)

    # Constant block index -> weights/biases stay resident in VMEM across grid steps.
    def const(a):
        return pl.BlockSpec(a.shape, lambda i: (0,) * a.ndim)

    in_specs = [
        pl.BlockSpec((tile_b, IN_DIM), lambda i: (i, 0)),     # x batch tile
        const(w1), const(b1),
        const(w2), const(b2),
        const(w3), const(b3),
        const(w4), const(b4),
    ]
    out_spec = pl.BlockSpec((tile_b, OUT_DIM), lambda i: (i, 0))

    out = pl.pallas_call(
        tttnet_kernel,
        out_shape=jax.ShapeDtypeStruct((b_pad, OUT_DIM), jnp.float32),
        grid=(n_steps,),
        in_specs=in_specs,
        out_specs=out_spec,
        compiler_params=pltpu.CompilerParams(
            dimension_semantics=("parallel",),   # megacore split on v7x; no-op on v5e/v6e
        ),
    )(x_in, w1, b1, w2, b2, w3, b3, w4, b4)

    return out if b_pad == B else out[:B]


def xavier_normal(key, fan_in, fan_out):
    # matches torch.nn.init.xavier_normal_ (gain=1): std = sqrt(2/(fan_in+fan_out));
    # stored as (in, out) so the kernel computes x @ W.
    std = jnp.sqrt(2.0 / (fan_in + fan_out))
    return std * jax.random.normal(key, (fan_in, fan_out), dtype=jnp.float32)


def linear_bias(key, fan_in, fan_out):
    # PyTorch nn.Linear default bias init: U(-1/sqrt(fan_in), 1/sqrt(fan_in))
    bound = 1.0 / jnp.sqrt(jnp.float32(fan_in))
    return jax.random.uniform(key, (1, fan_out), dtype=jnp.float32,
                              minval=-bound, maxval=bound)


def init_params(key):
    ks = jax.random.split(key, 8)
    # weights converted to bf16 once here (halves weight DMA, native MXU dtype);
    # biases stay f32 for the f32 elementwise epilogue.
    w1 = xavier_normal(ks[0], IN_DIM, HID).astype(jnp.bfloat16)
    b1 = linear_bias(ks[1], IN_DIM, HID)
    w2 = xavier_normal(ks[2], HID, HID).astype(jnp.bfloat16)
    b2 = linear_bias(ks[3], HID, HID)
    w3 = xavier_normal(ks[4], HID, HID).astype(jnp.bfloat16)
    b3 = linear_bias(ks[5], HID, HID)
    w4 = xavier_normal(ks[6], HID, OUT_DIM).astype(jnp.bfloat16)
    b4 = linear_bias(ks[7], HID, OUT_DIM)
    return (w1, b1, w2, b2, w3, b3, w4, b4)


def reference_forward(x, params):
    # Pure-JAX f32 reference (same bf16 weight values, f32 math).
    w1, b1, w2, b2, w3, b3, w4, b4 = params
    f32 = lambda a: a.astype(jnp.float32)
    h = jnp.maximum(x @ f32(w1) + b1, 0.0)
    h = jnp.maximum(h @ f32(w2) + b2, 0.0)
    h = jnp.maximum(h @ f32(w3) + b3, 0.0)
    return jax.nn.sigmoid(h @ f32(w4) + b4)


if __name__ == "__main__":
    key = jax.random.PRNGKey(0)
    pkey, xkey = jax.random.split(key)
    params = init_params(pkey)

    # bf16 matmul inputs -> relaxed tolerance vs the f32 reference (deliberate trade-off)
    TOL = 2e-2

    # small demo batch: single grid step
    B = 8
    x = jax.random.normal(xkey, (B, IN_DIM), dtype=jnp.float32)
    out = jax.block_until_ready(tttnet_forward(x, params))
    ref = jax.block_until_ready(reference_forward(x, params))
    assert out.shape == (B, OUT_DIM)
    assert jnp.allclose(out, ref, atol=TOL), "mismatch vs reference (B=8)"

    # larger batch with a small tile -> multi-step grid (even step count) + partial last block
    B2 = 600
    x2 = jax.random.normal(jax.random.PRNGKey(1), (B2, IN_DIM), dtype=jnp.float32)
    out2 = jax.block_until_ready(tttnet_forward(x2, params, tile_b=256))
    ref2 = jax.block_until_ready(reference_forward(x2, params))
    assert out2.shape == (B2, OUT_DIM)
    assert jnp.allclose(out2, ref2, atol=TOL), "mismatch vs reference (B=600)"

    # non-multiple-of-8 batch -> exercises the minimal batch pad + slice path
    B3 = 13
    x3 = jax.random.normal(jax.random.PRNGKey(2), (B3, IN_DIM), dtype=jnp.float32)
    out3 = jax.block_until_ready(tttnet_forward(x3, params))
    ref3 = jax.block_until_ready(reference_forward(x3, params))
    assert out3.shape == (B3, OUT_DIM)
    assert jnp.allclose(out3, ref3, atol=TOL), "mismatch vs reference (B=13)"

    print("KERNEL_OK")
</pallas_src>

<mosaic_0001>
module attributes {stable_mosaic.version = 11 : i64} {
  func.func @tttnet_kernel(%arg0: i32, %arg1: memref<8x90xf32, #tpu.memory_space<vmem>>, %arg2: memref<90x256xbf16, #tpu.memory_space<vmem>>, %arg3: memref<1x256xf32, #tpu.memory_space<vmem>>, %arg4: memref<256x256xbf16, #tpu.memory_space<vmem>>, %arg5: memref<1x256xf32, #tpu.memory_space<vmem>>, %arg6: memref<256x256xbf16, #tpu.memory_space<vmem>>, %arg7: memref<1x256xf32, #tpu.memory_space<vmem>>, %arg8: memref<256x81xbf16, #tpu.memory_space<vmem>>, %arg9: memref<1x81xf32, #tpu.memory_space<vmem>>, %arg10: memref<8x81xf32, #tpu.memory_space<vmem>>) attributes {dimension_semantics = [#tpu.dimension_semantics<parallel>], iteration_bounds = array<i64: 1>, scalar_prefetch = 0 : i64, scratch_operands = 0 : i64, tpu.core_type = #tpu.core_type<tc>, window_params = [{transform_indices = @transform_0, window_bounds = array<i64: 8, 90>}, {pipeline_mode = #tpu.pipeline_mode<synchronous>, transform_indices = @transform_1, window_bounds = array<i64: 90, 256>}, {pipeline_mode = #tpu.pipeline_mode<synchronous>, transform_indices = @transform_2, window_bounds = array<i64: 1, 256>}, {pipeline_mode = #tpu.pipeline_mode<synchronous>, transform_indices = @transform_3, window_bounds = array<i64: 256, 256>}, {pipeline_mode = #tpu.pipeline_mode<synchronous>, transform_indices = @transform_4, window_bounds = array<i64: 1, 256>}, {pipeline_mode = #tpu.pipeline_mode<synchronous>, transform_indices = @transform_5, window_bounds = array<i64: 256, 256>}, {pipeline_mode = #tpu.pipeline_mode<synchronous>, transform_indices = @transform_6, window_bounds = array<i64: 1, 256>}, {pipeline_mode = #tpu.pipeline_mode<synchronous>, transform_indices = @transform_7, window_bounds = array<i64: 256, 81>}, {pipeline_mode = #tpu.pipeline_mode<synchronous>, transform_indices = @transform_8, window_bounds = array<i64: 1, 81>}, {transform_indices = @transform_9, window_bounds = array<i64: 8, 81>}]} {
    %c0 = arith.constant 0 : index
    %c0_0 = arith.constant 0 : index
    %0 = vector.load %arg1[%c0, %c0_0] : memref<8x90xf32, #tpu.memory_space<vmem>>, vector<8x90xf32>
    %1 = arith.truncf %0 : vector<8x90xf32> to vector<8x90xbf16>
    %c0_1 = arith.constant 0 : index
    %c0_2 = arith.constant 0 : index
    %2 = vector.load %arg2[%c0_1, %c0_2] : memref<90x256xbf16, #tpu.memory_space<vmem>>, vector<90x256xbf16>
    %cst = arith.constant dense<0.000000e+00> : vector<8x256xf32>
    %3 = tpu.matmul %1, %2, %cst {dimension_numbers = #tpu.dot_dimension_numbers<[1], [0], [0], [1], [0, 0, 1, 1], [], []>} : vector<8x90xbf16>, vector<90x256xbf16>, vector<8x256xf32> -> vector<8x256xf32>
    %c0_3 = arith.constant 0 : index
    %c0_4 = arith.constant 0 : index
    %4 = vector.load %arg3[%c0_3, %c0_4] : memref<1x256xf32, #tpu.memory_space<vmem>>, vector<1x256xf32>
    %5 = vector.broadcast %4 : vector<1x256xf32> to vector<8x256xf32>
    %6 = arith.addf %3, %5 : vector<8x256xf32>
    %cst_5 = arith.constant 0.000000e+00 : f32
    %7 = vector.broadcast %cst_5 : f32 to vector<8x256xf32>
    %8 = arith.maximumf %6, %7 : vector<8x256xf32>
    %9 = arith.truncf %8 : vector<8x256xf32> to vector<8x256xbf16>
    %c0_6 = arith.constant 0 : index
    %c0_7 = arith.constant 0 : index
    %10 = vector.load %arg4[%c0_6, %c0_7] : memref<256x256xbf16, #tpu.memory_space<vmem>>, vector<256x256xbf16>
    %cst_8 = arith.constant dense<0.000000e+00> : vector<8x256xf32>
    %11 = tpu.matmul %9, %10, %cst_8 {dimension_numbers = #tpu.dot_dimension_numbers<[1], [0], [0], [1], [0, 0, 1, 1], [], []>} : vector<8x256xbf16>, vector<256x256xbf16>, vector<8x256xf32> -> vector<8x256xf32>
    %c0_9 = arith.constant 0 : index
    %c0_10 = arith.constant 0 : index
    %12 = vector.load %arg5[%c0_9, %c0_10] : memref<1x256xf32, #tpu.memory_space<vmem>>, vector<1x256xf32>
    %13 = vector.broadcast %12 : vector<1x256xf32> to vector<8x256xf32>
    %14 = arith.addf %11, %13 : vector<8x256xf32>
    %cst_11 = arith.constant 0.000000e+00 : f32
    %15 = vector.broadcast %cst_11 : f32 to vector<8x256xf32>
    %16 = arith.maximumf %14, %15 : vector<8x256xf32>
    %17 = arith.truncf %16 : vector<8x256xf32> to vector<8x256xbf16>
    %c0_12 = arith.constant 0 : index
    %c0_13 = arith.constant 0 : index
    %18 = vector.load %arg6[%c0_12, %c0_13] : memref<256x256xbf16, #tpu.memory_space<vmem>>, vector<256x256xbf16>
    %cst_14 = arith.constant dense<0.000000e+00> : vector<8x256xf32>
    %19 = tpu.matmul %17, %18, %cst_14 {dimension_numbers = #tpu.dot_dimension_numbers<[1], [0], [0], [1], [0, 0, 1, 1], [], []>} : vector<8x256xbf16>, vector<256x256xbf16>, vector<8x256xf32> -> vector<8x256xf32>
    %c0_15 = arith.constant 0 : index
    %c0_16 = arith.constant 0 : index
    %20 = vector.load %arg7[%c0_15, %c0_16] : memref<1x256xf32, #tpu.memory_space<vmem>>, vector<1x256xf32>
    %21 = vector.broadcast %20 : vector<1x256xf32> to vector<8x256xf32>
    %22 = arith.addf %19, %21 : vector<8x256xf32>
    %cst_17 = arith.constant 0.000000e+00 : f32
    %23 = vector.broadcast %cst_17 : f32 to vector<8x256xf32>
    %24 = arith.maximumf %22, %23 : vector<8x256xf32>
    %25 = arith.truncf %24 : vector<8x256xf32> to vector<8x256xbf16>
    %c0_18 = arith.constant 0 : index
    %c0_19 = arith.constant 0 : index
    %26 = vector.load %arg8[%c0_18, %c0_19] : memref<256x81xbf16, #tpu.memory_space<vmem>>, vector<256x81xbf16>
    %cst_20 = arith.constant dense<0.000000e+00> : vector<8x81xf32>
    %27 = tpu.matmul %25, %26, %cst_20 {dimension_numbers = #tpu.dot_dimension_numbers<[1], [0], [0], [1], [0, 0, 1, 1], [], []>} : vector<8x256xbf16>, vector<256x81xbf16>, vector<8x81xf32> -> vector<8x81xf32>
    %c0_21 = arith.constant 0 : index
    %c0_22 = arith.constant 0 : index
    %28 = vector.load %arg9[%c0_21, %c0_22] : memref<1x81xf32, #tpu.memory_space<vmem>>, vector<1x81xf32>
    %29 = vector.broadcast %28 : vector<1x81xf32> to vector<8x81xf32>
    %30 = arith.addf %27, %29 : vector<8x81xf32>
    %cst_23 = arith.constant 5.000000e-01 : f32
    %31 = vector.broadcast %cst_23 : f32 to vector<8x81xf32>
    %32 = arith.mulf %31, %30 : vector<8x81xf32>
    %33 = math.tanh %32 : vector<8x81xf32>
    %cst_24 = arith.constant 1.000000e+00 : f32
    %34 = vector.broadcast %cst_24 : f32 to vector<8x81xf32>
    %35 = arith.addf %33, %34 : vector<8x81xf32>
    %cst_25 = arith.constant 5.000000e-01 : f32
    %36 = vector.broadcast %cst_25 : f32 to vector<8x81xf32>
    %37 = arith.mulf %36, %35 : vector<8x81xf32>
    %c0_26 = arith.constant 0 : index
    %c0_27 = arith.constant 0 : index
    %38 = vector.load %arg10[%c0_26, %c0_27] : memref<8x81xf32, #tpu.memory_space<vmem>>, vector<8x81xf32>
    tpu.vector_store %arg10[%c0_26, %c0_27], %37 {strides = array<i32>} : memref<8x81xf32, #tpu.memory_space<vmem>>, vector<8x81xf32>,
    return
  }
  func.func @transform_0(%arg0: i32) -> (i32, i32) {
    %c0_i32 = arith.constant 0 : i32
    %c0_i32_0 = arith.constant 0 : i32
    return %arg0, %c0_i32 : i32, i32
  }
  func.func @transform_1(%arg0: i32) -> (i32, i32) {
    %c0_i32 = arith.constant 0 : i32
    %c0_i32_0 = arith.constant 0 : i32
    %c0_i32_1 = arith.constant 0 : i32
    return %c0_i32, %c0_i32_0 : i32, i32
  }
  func.func @transform_2(%arg0: i32) -> (i32, i32) {
    %c0_i32 = arith.constant 0 : i32
    %c0_i32_0 = arith.constant 0 : i32
    %c0_i32_1 = arith.constant 0 : i32
    return %c0_i32, %c0_i32_0 : i32, i32
  }
  func.func @transform_3(%arg0: i32) -> (i32, i32) {
    %c0_i32 = arith.constant 0 : i32
    %c0_i32_0 = arith.constant 0 : i32
    %c0_i32_1 = arith.constant 0 : i32
    return %c0_i32, %c0_i32_0 : i32, i32
  }
  func.func @transform_4(%arg0: i32) -> (i32, i32) {
    %c0_i32 = arith.constant 0 : i32
    %c0_i32_0 = arith.constant 0 : i32
    %c0_i32_1 = arith.constant 0 : i32
    return %c0_i32, %c0_i32_0 : i32, i32
  }
  func.func @transform_5(%arg0: i32) -> (i32, i32) {
    %c0_i32 = arith.constant 0 : i32
    %c0_i32_0 = arith.constant 0 : i32
    %c0_i32_1 = arith.constant 0 : i32
    return %c0_i32, %c0_i32_0 : i32, i32
  }
  func.func @transform_6(%arg0: i32) -> (i32, i32) {
    %c0_i32 = arith.constant 0 : i32
    %c0_i32_0 = arith.constant 0 : i32
    %c0_i32_1 = arith.constant 0 : i32
    return %c0_i32, %c0_i32_0 : i32, i32
  }
  func.func @transform_7(%arg0: i32) -> (i32, i32) {
    %c0_i32 = arith.constant 0 : i32
    %c0_i32_0 = arith.constant 0 : i32
    %c0_i32_1 = arith.constant 0 : i32
    return %c0_i32, %c0_i32_0 : i32, i32
  }
  func.func @transform_8(%arg0: i32) -> (i32, i32) {
    %c0_i32 = arith.constant 0 : i32
    %c0_i32_0 = arith.constant 0 : i32
    %c0_i32_1 = arith.constant 0 : i32
    return %c0_i32, %c0_i32_0 : i32, i32
  }
  func.func @transform_9(%arg0: i32) -> (i32, i32) {
    %c0_i32 = arith.constant 0 : i32
    %c0_i32_0 = arith.constant 0 : i32
    return %arg0, %c0_i32 : i32, i32
  }
}

</mosaic_0001>

<bundles_post_ra>
// kernel: tpu_custom_call.1
= control target key start
LH: loop header
LB: loop body
LE: loop exit
PB: predicated region body
PF: predicated region fallthrough
CT: control target
= control target key end

     0   :  { %14 = vsyncpa [#allocation3], 0  ;;  %s1624_s0 = inlined_call_operand.vmem [shape: f32[8,90], index: 0, kind: input, shape index: {}]   ;;  %s1625_s1 = inlined_call_operand.vmem [shape: bf16[90,256], index: 1, kind: input, shape index: {}]   ;;  %s1626_s2 = inlined_call_operand.vmem [shape: f32[1,256], index: 2, kind: input, shape index: {}]   ;;  %s1627_s3 = inlined_call_operand.hbm [shape: bf16[256,256], index: 3, kind: input, shape index: {}]   ;;  %s1628_s4 = inlined_call_operand.vmem [shape: f32[1,256], index: 4, kind: input, shape index: {}]   ;;  %s1629_s5 = inlined_call_operand.hbm [shape: bf16[256,256], index: 5, kind: input, shape index: {}]   ;;  %s1630_s6 = inlined_call_operand.vmem [shape: f32[1,256], index: 6, kind: input, shape index: {}]   ;;  %s1631_s7 = inlined_call_operand.vmem [shape: bf16[256,81], index: 7, kind: input, shape index: {}]   ;;  %s1632_s8 = inlined_call_operand.vmem [shape: f32[1,81], index: 8, kind: input, shape index: {}]   ;;  %s1633_s9 = inlined_call_operand.hbm [shape: f32[8,81], index: 9, kind: output, shape index: {}]  }
   0x1   :  { %15 = vsyncpa [#allocation6], 0 }
   0x2   :  { %16 = vsyncpa [#allocation4], 0  ;;  %s27_s11 = sshll.u32 %s1627_s3, 4  ;;  %s1423_s12 = smov [#allocation2]   ;;  %s28_s11 = int_to_ptr.hbm [resolvable:$true] %s27_s11 }
   0x3   :  { %s29_s13 = sshll.u32 %s1423_s12, 4  ;;  %s42_s16 = sshll.u32 %s1629_s5, 4  ;;  %s30_s13 = int_to_ptr.vmem [resolvable:$true] %s29_s13  ;;  %s43_s16 = int_to_ptr.hbm [resolvable:$true] %s42_s16 }
   0x4   :  { %s1424_s17 = smov 128   ;;  %s1425_s18 = smov 8  }
   0x5   :  { %35 = dma.hbm_to_vmem [thread:$0]  %s28_s11, 4096, %s30_s13, [#allocation3], %s1424_s17, %s1424_s17, %s1425_s18  }
   0x6   :  { %s1426_s19 = smov [#allocation5]  }
   0x7   :  { %s44_s20 = sshll.u32 %s1426_s19, 4  ;;  %s45_s20 = int_to_ptr.vmem [resolvable:$true] %s44_s20 }
   0x8   :  { %50 = dma.hbm_to_vmem [thread:$0]  %s43_s16, 4096, %s45_s20, [#allocation6], %s1424_s17, %s1424_s17, %s1425_s18  }
   0x9   :  { %1417 = dma.done.wait [#allocation3], 4096  }
   0xa   :  { %1418 = vsyncadd [#allocation3], 4294963200 }
   0xb   :  { %1419 = dma.done.wait [#allocation6], 4096  }
   0xc   :  { %1420 = vsyncadd [#allocation6], 4294963200  ;;  %vm148_vm0 = vcmask 1044480   ;;  %v917_v0 = vld [vmem:[%s1625_s1 + $0x50] sm:$0xf]  ;;  %v66_v63 = vld [vmem:[%s1624_s0] sm:$0xff] }
   0xd   :  { %v1256_v1 = vld [vmem:[%s1625_s1 + $0x54] sm:$0x10]  ;;  %v1255_v2 = vld [vmem:[%s1625_s1 + $0x54] sm:$0xf]  ;;  %v919_v4 = vld [vmem:[%s1625_s1 + $0x58] sm:$0x10] }
   0xe   :  { %v918_v3 = vor.u32 %v1256_v1, %v917_v0  ;;  %v909_v5 = vld [vmem:[%s1625_s1 + $0x40] sm:$0xf]  ;;  %v1254_v6 = vld [vmem:[%s1625_s1 + $0x44] sm:$0xf0]  ;;  %v922_v7 = vor.u32 %v1255_v2, %v919_v4  ;;  %v1253_v8 = vld [vmem:[%s1625_s1 + $0x44] sm:$0xf] }
   0xf   :  { %v911_v9 = vld [vmem:[%s1625_s1 + $0x48] sm:$0xf0]  ;;  %v910_v12 = vor.u32 %v1254_v6, %v909_v5  ;;  %v901_v14 = vld [vmem:[%s1625_s1 + $0x30] sm:$0xf]  ;;  %v1252_v15 = vld [vmem:[%s1625_s1 + $0x34] sm:$0xf0] }
  0x10   :  { %v150_v10 = vsel %vm148_vm0, %v918_v3, 0  ;;  %v153_v11 = vsel %vm148_vm0, %v922_v7, 0  ;;  %v914_v13 = vor.u32 %v1253_v8, %v911_v9  ;;  %v1251_v16 = vld [vmem:[%s1625_s1 + $0x34] sm:$0xf]  ;;  %v903_v17 = vld [vmem:[%s1625_s1 + $0x38] sm:$0xf0]  ;;  %v902_v18 = vor.u32 %v1252_v15, %v901_v14 }
  0x11   :  { %157 = vmatpush.bf16.msra.mxu0 %v150_v10  ;;  %170 = vmatpush.bf16.msra.mxu1 %v153_v11  ;;  %v893_v19 = vld [vmem:[%s1625_s1 + $0x20] sm:$0xf]  ;;  %v1250_v20 = vld [vmem:[%s1625_s1 + $0x24] sm:$0xf0]  ;;  %v983_v21 = vld [vmem:[#allocation2 + $0x70] sm:$0xf]  ;;  %v906_v22 = vor.u32 %v1251_v16, %v903_v17  ;;  %v67_v10 = vpack.c.bf16 %v66_v63, %v66_v63 }
  0x12   :  { %v1272_v23 = vld [vmem:[#allocation2 + $0x74] sm:$0xf0]  ;;  %v1047_v24 = vld [vmem:[#allocation2 + $0xf0] sm:$0xf]  ;;  %v1249_v26 = vld [vmem:[%s1625_s1 + $0x24] sm:$0xf]  ;;  %v894_v32 = vor.u32 %v1250_v20, %v893_v19 }
  0x13   :  { %v1288_v25 = vld [vmem:[#allocation2 + $0xf4] sm:$0xf0]  ;;  %v895_v27 = vld [vmem:[%s1625_s1 + $0x28] sm:$0xf0]  ;;  %v984_v28 = vor.u32 %v1272_v23, %v983_v21  ;;  %v975_v30 = vld [vmem:[#allocation2 + $0x60] sm:$0xf] }
  0x14   :  { %v1048_v29 = vor.u32 %v1288_v25, %v1047_v24  ;;  %v1270_v31 = vld [vmem:[#allocation2 + $0x64] sm:$0xf0]  ;;  %v885_v33 = vld [vmem:[%s1625_s1 + $0x10] sm:$0xf]  ;;  %v1039_v35 = vld [vmem:[#allocation2 + $0xe0] sm:$0xf]  ;;  %v898_v37 = vor.u32 %v1249_v26, %v895_v27 }
  0x15   :  { %158 = vmatpush.bf16.msra.mxu0 %v910_v12  ;;  %171 = vmatpush.bf16.msra.mxu1 %v914_v13  ;;  %v976_v34 = vor.u32 %v1270_v31, %v975_v30  ;;  %v1286_v36 = vld [vmem:[#allocation2 + $0xe4] sm:$0xf0]  ;;  %v1248_v38 = vld [vmem:[%s1625_s1 + $0x14] sm:$0xf0]  ;;  %v1247_v39 = vld [vmem:[%s1625_s1 + $0x14] sm:$0xf] }
  0x16   :  { %383 = vmatpush.bf16.msra.mxu2 %v984_v28  ;;  %v887_v40 = vld [vmem:[%s1625_s1 + $0x18] sm:$0xf0]  ;;  %396 = vmatpush.bf16.msra.mxu3 %v1048_v29  ;;  %v1040_v41 = vor.u32 %v1286_v36, %v1039_v35  ;;  %v967_v42 = vld [vmem:[#allocation2 + $0x50] sm:$0xf]  ;;  %v1268_v43 = vld [vmem:[#allocation2 + $0x54] sm:$0xf0]  ;;  %v886_v46 = vor.u32 %v1248_v38, %v885_v33 }
  0x17   :  { %v1031_v44 = vld [vmem:[#allocation2 + $0xd0] sm:$0xf]  ;;  %v1284_v45 = vld [vmem:[#allocation2 + $0xd4] sm:$0xf0]  ;;  %v877_v47 = vld [vmem:[%s1625_s1] sm:$0xf]  ;;  %v968_v50 = vor.u32 %v1268_v43, %v967_v42  ;;  %v890_v51 = vor.u32 %v1247_v39, %v887_v40 }
  0x18   :  { %v1246_v48 = vld [vmem:[%s1625_s1 + $0x4] sm:$0xf0]  ;;  %v1245_v49 = vld [vmem:[%s1625_s1 + $0x4] sm:$0xf]  ;;  %v879_v52 = vld [vmem:[%s1625_s1 + $0x8] sm:$0xf0]  ;;  %v1032_v53 = vor.u32 %v1284_v45, %v1031_v44 }
  0x19   :  { %159 = vmatpush.bf16.msra.mxu0 %v902_v18  ;;  %172 = vmatpush.bf16.msra.mxu1 %v906_v22  ;;  %v959_v54 = vld [vmem:[#allocation2 + $0x40] sm:$0xf]  ;;  %v1266_v55 = vld [vmem:[#allocation2 + $0x44] sm:$0xf0]  ;;  %v1271_v56 = vld [vmem:[#allocation2 + $0x74] sm:$0xf]  ;;  %v878_v62 = vor.u32 %v1246_v48, %v877_v47  ;;  %v882_v1 = vor.u32 %v1245_v49, %v879_v52 }
  0x1a   :  { %384 = vmatpush.bf16.msra.mxu2 %v976_v34  ;;  %397 = vmatpush.bf16.msra.mxu3 %v1040_v41  ;;  %v985_v57 = vld [vmem:[#allocation2 + $0x78] sm:$0xf0]  ;;  %v1287_v58 = vld [vmem:[#allocation2 + $0xf4] sm:$0xf]  ;;  %v1023_v60 = vld [vmem:[#allocation2 + $0xc0] sm:$0xf]  ;;  %v960_v0 = vor.u32 %v1266_v55, %v959_v54 }
  0x1b   :  { %v1049_v59 = vld [vmem:[#allocation2 + $0xf8] sm:$0xf0]  ;;  %v1282_v61 = vld [vmem:[#allocation2 + $0xc4] sm:$0xf0]  ;;  %v988_v2 = vor.u32 %v1271_v56, %v985_v57  ;;  %v951_v3 = vld [vmem:[#allocation2 + $0x30] sm:$0xf] }
  0x1c   :  { %v1264_v4 = vld [vmem:[#allocation2 + $0x34] sm:$0xf0]  ;;  %v1052_v5 = vor.u32 %v1287_v58, %v1049_v59  ;;  %v1269_v6 = vld [vmem:[#allocation2 + $0x64] sm:$0xf]  ;;  %v977_v7 = vld [vmem:[#allocation2 + $0x68] sm:$0xf0]  ;;  %v1024_v9 = vor.u32 %v1282_v61, %v1023_v60 }
  0x1d   :  { %160 = vmatpush.bf16.msra.mxu0 %v894_v32  ;;  %173 = vmatpush.bf16.msra.mxu1 %v898_v37  ;;  %v1285_v8 = vld [vmem:[#allocation2 + $0xe4] sm:$0xf]  ;;  %v1041_v11 = vld [vmem:[#allocation2 + $0xe8] sm:$0xf0]  ;;  %v1015_v12 = vld [vmem:[#allocation2 + $0xb0] sm:$0xf]  ;;  %v952_v14 = vor.u32 %v1264_v4, %v951_v3  ;;  %v980_v15 = vor.u32 %v1269_v6, %v977_v7 }
  0x1e   :  { %385 = vmatpush.bf16.msra.mxu2 %v968_v50  ;;  %398 = vmatpush.bf16.msra.mxu3 %v1032_v53  ;;  %v1280_v13 = vld [vmem:[#allocation2 + $0xb4] sm:$0xf0]  ;;  %vm144_vm1 = vcmask 736256   ;;  %v943_v16 = vld [vmem:[#allocation2 + $0x20] sm:$0xf]  ;;  %v1044_v18 = vor.u32 %v1285_v8, %v1041_v11  ;;  %s1427_s10 = smov [#allocation7]  }
  0x1f   :  { %v1262_v17 = vld [vmem:[#allocation2 + $0x24] sm:$0xf0]  ;;  %v1267_v19 = vld [vmem:[#allocation2 + $0x54] sm:$0xf]  ;;  %v969_v20 = vld [vmem:[#allocation2 + $0x58] sm:$0xf0]  ;;  %v1016_v22 = vor.u32 %v1280_v13, %v1015_v12 }
  0x20   :  { %v1283_v21 = vld [vmem:[#allocation2 + $0xd4] sm:$0xf]  ;;  %v1033_v23 = vld [vmem:[#allocation2 + $0xd8] sm:$0xf0]  ;;  %v1007_v24 = vld [vmem:[#allocation2 + $0xa0] sm:$0xf]  ;;  %v944_v26 = vor.u32 %v1262_v17, %v943_v16  ;;  %v972_v27 = vor.u32 %v1267_v19, %v969_v20 }
  0x21   :  { %161 = vmatpush.bf16.msra.mxu0 %v886_v46  ;;  %174 = vmatpush.bf16.msra.mxu1 %v890_v51  ;;  %v1278_v25 = vld [vmem:[#allocation2 + $0xa4] sm:$0xf0]  ;;  %v1036_v28 = vor.u32 %v1283_v21, %v1033_v23  ;;  %v1265_v29 = vld [vmem:[#allocation2 + $0x44] sm:$0xf]  ;;  %v961_v30 = vld [vmem:[#allocation2 + $0x48] sm:$0xf0] }
  0x22   :  { %386 = vmatpush.bf16.msra.mxu2 %v960_v0  ;;  %399 = vmatpush.bf16.msra.mxu3 %v1024_v9  ;;  %v1008_v31 = vor.u32 %v1278_v25, %v1007_v24  ;;  %v1281_v32 = vld [vmem:[#allocation2 + $0xc4] sm:$0xf]  ;;  %v1025_v33 = vld [vmem:[#allocation2 + $0xc8] sm:$0xf0]  ;;  %v964_v34 = vor.u32 %v1265_v29, %v961_v30  ;;  %v1263_v36 = vld [vmem:[#allocation2 + $0x34] sm:$0xf] }
  0x23   :  { %v1028_v35 = vor.u32 %v1281_v32, %v1025_v33  ;;  %v953_v37 = vld [vmem:[#allocation2 + $0x38] sm:$0xf0]  ;;  %v1279_v38 = vld [vmem:[#allocation2 + $0xb4] sm:$0xf]  ;;  %v1261_v42 = vld [vmem:[#allocation2 + $0x24] sm:$0xf] }
  0x24   :  { %v1017_v39 = vld [vmem:[#allocation2 + $0xb8] sm:$0xf0]  ;;  %v956_v40 = vor.u32 %v1263_v36, %v953_v37  ;;  %v945_v43 = vld [vmem:[#allocation2 + $0x28] sm:$0xf0]  ;;  %v1277_v44 = vld [vmem:[#allocation2 + $0xa4] sm:$0xf] }
  0x25   :  { %162 = vmatpush.bf16.msra.mxu0 %v878_v62  ;;  %175 = vmatpush.bf16.msra.mxu1 %v882_v1  ;;  %v1020_v41 = vor.u32 %v1279_v38, %v1017_v39  ;;  %v1009_v45 = vld [vmem:[#allocation2 + $0xa8] sm:$0xf0]  ;;  %v948_v46 = vor.u32 %v1261_v42, %v945_v43  ;;  %v935_v48 = vld [vmem:[#allocation2 + $0x10] sm:$0xf]  ;;  %v1260_v49 = vld [vmem:[#allocation2 + $0x14] sm:$0xf0] }
  0x26   :  { %387 = vmatpush.bf16.msra.mxu2 %v952_v14  ;;  %400 = vmatpush.bf16.msra.mxu3 %v1016_v22  ;;  %v1012_v47 = vor.u32 %v1277_v44, %v1009_v45  ;;  %v999_v50 = vld [vmem:[#allocation2 + $0x90] sm:$0xf]  ;;  %v936_v51 = vor.u32 %v1260_v49, %v935_v48  ;;  %v1276_v52 = vld [vmem:[#allocation2 + $0x94] sm:$0xf0]  ;;  %v1259_v53 = vld [vmem:[#allocation2 + $0x14] sm:$0xf] }
  0x27   :  { %v937_v54 = vld [vmem:[#allocation2 + $0x18] sm:$0xf0]  ;;  %v1000_v55 = vor.u32 %v1276_v52, %v999_v50  ;;  %v1275_v57 = vld [vmem:[#allocation2 + $0x94] sm:$0xf]  ;;  %v927_v60 = vld [vmem:[#allocation2] sm:$0xf] }
  0x28   :  { %923 = vmatmul.msk.bf16.vlgmr.msra.gmra.mxu0 %vm144_vm1, %v67_v10  ;;  %924 = vmatmul.msk.bf16.vlgmr.msra.gmra.mxu1 %vm144_vm1, %v67_v10  ;;  %v940_v56 = vor.u32 %v1259_v53, %v937_v54  ;;  %v1001_v58 = vld [vmem:[#allocation2 + $0x98] sm:$0xf0]  ;;  %v1258_v61 = vld [vmem:[#allocation2 + $0x4] sm:$0xf0]  ;;  %v991_v62 = vld [vmem:[#allocation2 + $0x80] sm:$0xf] }
  0x29   :  { %409 = vmatpush.bf16.msrb.mxu0 %v988_v2  ;;  %422 = vmatpush.bf16.msrb.mxu1 %v1052_v5  ;;  %v1004_v59 = vor.u32 %v1275_v57, %v1001_v58  ;;  %v928_v63 = vor.u32 %v1258_v61, %v927_v60  ;;  %v1274_v0 = vld [vmem:[#allocation2 + $0x84] sm:$0xf0]  ;;  %v1257_v1 = vld [vmem:[#allocation2 + $0x4] sm:$0xf]  ;;  %v929_v2 = vld [vmem:[#allocation2 + $0x8] sm:$0xf0] }
  0x2a   :  { %388 = vmatpush.bf16.msra.mxu2 %v944_v26  ;;  %401 = vmatpush.bf16.msra.mxu3 %v1008_v31  ;;  %v992_v3 = vor.u32 %v1274_v0, %v991_v62  ;;  %v932_v4 = vor.u32 %v1257_v1, %v929_v2  ;;  %v1273_v5 = vld [vmem:[#allocation2 + $0x84] sm:$0xf]  ;;  %v993_v6 = vld [vmem:[#allocation2 + $0x88] sm:$0xf0]  ;;  %v1175_v8 = vld [vmem:[#allocation5 + $0xf0] sm:$0xf] }
  0x2b   :  { %v996_v7 = vor.u32 %v1273_v5, %v993_v6  ;;  %v1320_v9 = vld [vmem:[#allocation5 + $0xf4] sm:$0xf0]  ;;  %v1319_v10 = vld [vmem:[#allocation5 + $0xf4] sm:$0xf]  ;;  %v1177_v12 = vld [vmem:[#allocation5 + $0xf8] sm:$0xf0] }
  0x2c   :  { %v1176_v11 = vor.u32 %v1320_v9, %v1175_v8  ;;  %v1167_v13 = vld [vmem:[#allocation5 + $0xe0] sm:$0xf]  ;;  %v1318_v14 = vld [vmem:[#allocation5 + $0xe4] sm:$0xf0]  ;;  %v1317_v16 = vld [vmem:[#allocation5 + $0xe4] sm:$0xf] }
  0x2d   :  { %410 = vmatpush.bf16.msrb.mxu0 %v980_v15  ;;  %423 = vmatpush.bf16.msrb.mxu1 %v1044_v18  ;;  %v1180_v15 = vor.u32 %v1319_v10, %v1177_v12  ;;  %v1169_v17 = vld [vmem:[#allocation5 + $0xe8] sm:$0xf0]  ;;  %v1111_v18 = vld [vmem:[#allocation5 + $0x70] sm:$0xf]  ;;  %v1168_v19 = vor.u32 %v1318_v14, %v1167_v13  ;;  %v1304_v20 = vld [vmem:[#allocation5 + $0x74] sm:$0xf0] }
  0x2e   :  { %389 = vmatpush.bf16.msra.mxu2 %v936_v51  ;;  %402 = vmatpush.bf16.msra.mxu3 %v1000_v55  ;;  %v1303_v21 = vld [vmem:[#allocation5 + $0x74] sm:$0xf]  ;;  %v1113_v22 = vld [vmem:[#allocation5 + $0x78] sm:$0xf0]  ;;  %v1172_v23 = vor.u32 %v1317_v16, %v1169_v17  ;;  %v1112_v24 = vor.u32 %v1304_v20, %v1111_v18  ;;  %v1159_v26 = vld [vmem:[#allocation5 + $0xd0] sm:$0xf] }
  0x2f   :  { %v1116_v25 = vor.u32 %v1303_v21, %v1113_v22  ;;  %v1161_v29 = vld [vmem:[#allocation5 + $0xd8] sm:$0xf0]  ;;  %v1103_v30 = vld [vmem:[#allocation5 + $0x60] sm:$0xf]  ;;  %v1302_v31 = vld [vmem:[#allocation5 + $0x64] sm:$0xf0] }
  0x30   :  { %v1104_v32 = vor.u32 %v1302_v31, %v1103_v30  ;;  %v1301_v33 = vld [vmem:[#allocation5 + $0x64] sm:$0xf]  ;;  %v1151_v37 = vld [vmem:[#allocation5 + $0xc0] sm:$0xf]  ;;  %v1314_v38 = vld [vmem:[#allocation5 + $0xc4] sm:$0xf0] }
  0x31   :  { %411 = vmatpush.bf16.msrb.mxu0 %v972_v27  ;;  %424 = vmatpush.bf16.msrb.mxu1 %v1036_v28  ;;  %v1316_v27 = vld [vmem:[#allocation5 + $0xd4] sm:$0xf0]  ;;  %v1315_v28 = vld [vmem:[#allocation5 + $0xd4] sm:$0xf]  ;;  %v1313_v43 = vld [vmem:[#allocation5 + $0xc4] sm:$0xf]  ;;  %v1152_v49 = vor.u32 %v1314_v38, %v1151_v37 }
  0x32   :  { %390 = vmatpush.bf16.msra.mxu2 %v928_v63  ;;  %403 = vmatpush.bf16.msra.mxu3 %v992_v3  ;;  %v1164_v39 = vor.u32 %v1315_v28, %v1161_v29  ;;  %v1299_v42 = vld [vmem:[#allocation5 + $0x54] sm:$0xf]  ;;  %v1153_v44 = vld [vmem:[#allocation5 + $0xc8] sm:$0xf0]  ;;  %v1097_v45 = vld [vmem:[#allocation5 + $0x58] sm:$0xf0] }
  0x33   :  { %v1087_v48 = vld [vmem:[#allocation5 + $0x40] sm:$0xf]  ;;  %v1298_v50 = vld [vmem:[#allocation5 + $0x44] sm:$0xf0]  ;;  %v1297_v51 = vld [vmem:[#allocation5 + $0x44] sm:$0xf]  ;;  %v1156_v53 = vor.u32 %v1313_v43, %v1153_v44 }
  0x34   :  { %v1089_v52 = vld [vmem:[#allocation5 + $0x48] sm:$0xf0]  ;;  %v1143_v54 = vld [vmem:[#allocation5 + $0xb0] sm:$0xf]  ;;  %v1312_v55 = vld [vmem:[#allocation5 + $0xb4] sm:$0xf0]  ;;  %v1088_v58 = vor.u32 %v1298_v50, %v1087_v48 }
  0x35   :  { %412 = vmatpush.bf16.msrb.mxu0 %v964_v34  ;;  %425 = vmatpush.bf16.msrb.mxu1 %v1028_v35  ;;  %v1105_v34 = vld [vmem:[#allocation5 + $0x68] sm:$0xf0]  ;;  %v1160_v35 = vor.u32 %v1316_v27, %v1159_v26  ;;  %v1145_v57 = vld [vmem:[#allocation5 + $0xb8] sm:$0xf0]  ;;  %v1144_v60 = vor.u32 %v1312_v55, %v1143_v54  ;;  %v1135_v62 = vld [vmem:[#allocation5 + $0xa0] sm:$0xf] }
  0x36   :  { %650 = vmatpush.bf16.msrb.mxu3 %v1176_v11  ;;  %637 = vmatpush.bf16.msrb.mxu2 %v1112_v24  ;;  %v1108_v36 = vor.u32 %v1301_v33, %v1105_v34  ;;  %v1310_v63 = vld [vmem:[#allocation5 + $0xa4] sm:$0xf0]  ;;  %v80_v0 = vld [vmem:[%s1626_s2] sm:$0x3]  ;;  %v1309_v1 = vld [vmem:[#allocation5 + $0xa4] sm:$0xf] }
  0x37   :  { %v1137_v2 = vld [vmem:[#allocation5 + $0xa8] sm:$0xf0]  ;;  %v1136_v3 = vor.u32 %v1310_v63, %v1135_v62  ;;  %v83_v6 = vperm.slane %v80_v0, 1  ;;  %v1079_v17 = vld [vmem:[#allocation5 + $0x30] sm:$0xf]  ;;  %v1328_v54 = vld [vmem:[%s1631_s7 + $0x38] sm:$0xff] }
  0x38   :  { %v1140_v5 = vor.u32 %v1309_v1, %v1137_v2  ;;  %v1296_v18 = vld [vmem:[#allocation5 + $0x34] sm:$0xf0]  ;;  %v1081_v21 = vld [vmem:[#allocation5 + $0x38] sm:$0xf0]  ;;  %v1071_v29 = vld [vmem:[#allocation5 + $0x20] sm:$0xf] }
  0x39   :  { %413 = vmatpush.bf16.msrb.mxu0 %v956_v40  ;;  %426 = vmatpush.bf16.msrb.mxu1 %v1020_v41  ;;  %v1095_v40 = vld [vmem:[#allocation5 + $0x50] sm:$0xf]  ;;  %v1300_v41 = vld [vmem:[#allocation5 + $0x54] sm:$0xf0]  ;;  %v1080_v20 = vor.u32 %v1296_v18, %v1079_v17  ;;  %v1129_v27 = vld [vmem:[#allocation5 + $0x98] sm:$0xf0] }
  0x3a   :  { %651 = vmatpush.bf16.msrb.mxu3 %v1168_v19  ;;  %638 = vmatpush.bf16.msrb.mxu2 %v1104_v32  ;;  %v1295_v19 = vld [vmem:[#allocation5 + $0x34] sm:$0xf]  ;;  %v1308_v24 = vld [vmem:[#allocation5 + $0x94] sm:$0xf0]  ;;  %v1294_v30 = vld [vmem:[#allocation5 + $0x24] sm:$0xf0] }
  0x3b   :  { %v1084_v22 = vor.u32 %v1295_v19, %v1081_v21  ;;  %v1293_v31 = vld [vmem:[#allocation5 + $0x24] sm:$0xf]  ;;  %v1072_v32 = vor.u32 %v1294_v30, %v1071_v29  ;;  %v1073_v33 = vld [vmem:[#allocation5 + $0x28] sm:$0xf0]  ;;  %v1291_v44 = vld [vmem:[#allocation5 + $0x14] sm:$0xf] }
  0x3c   :  { %v1076_v34 = vor.u32 %v1293_v31, %v1073_v33  ;;  %v1305_v37 = vld [vmem:[#allocation5 + $0x84] sm:$0xf]  ;;  %v1290_v48 = vld [vmem:[#allocation5 + $0x4] sm:$0xf0]  ;;  %v1335_v55 = vld [vmem:[%s1631_s7 + $0x70] sm:$0xff]  ;;  %s862_s11 = sshll.u32 %s1427_s10, 4  ;;  %s863_s11 = int_to_ptr.vmem [resolvable:$true] %s862_s11 }
  0x3d   :  { %414 = vmatpush.bf16.msrb.mxu0 %v948_v46  ;;  %427 = vmatpush.bf16.msrb.mxu1 %v1012_v47  ;;  %v1096_v46 = vor.u32 %v1300_v41, %v1095_v40  ;;  %v1100_v47 = vor.u32 %v1299_v42, %v1097_v45  ;;  %v1063_v41 = vld [vmem:[#allocation5 + $0x10] sm:$0xf]  ;;  %v1292_v42 = vld [vmem:[#allocation5 + $0x14] sm:$0xf0]  ;;  %v1065_v45 = vld [vmem:[#allocation5 + $0x18] sm:$0xf0] }
  0x3e   :  { %652 = vmatpush.bf16.msrb.mxu3 %v1160_v35  ;;  %v1119_v35 = vld [vmem:[#allocation5 + $0x80] sm:$0xf]  ;;  %v1064_v43 = vor.u32 %v1292_v42, %v1063_v41  ;;  %v1331_v17 = vld [vmem:[%s1631_s7 + $0x50] sm:$0xff]  ;;  %v1324_v18 = vld [vmem:[%s1631_s7 + $0x18] sm:$0xff]  ;;  %s864_s14 = sshll.u32 %s1633_s9, 4  ;;  %vm855_vm2 = vcmask 662528   ;;  %s865_s14 = int_to_ptr.hbm [resolvable:$true] %s864_s14 }
  0x3f   :  { %639 = vmatpush.bf16.msrb.mxu2 %v1096_v46  ;;  %v1068_v46 = vor.u32 %v1291_v44, %v1065_v45  ;;  %v1330_v19 = vld [vmem:[%s1631_s7 + $0x48] sm:$0xff]  ;;  %v1329_v21 = vld [vmem:[%s1631_s7 + $0x40] sm:$0xff] }
  0x40   :  { %v1342_v44 = vld [vmem:[%s1632_s8] ss:$0 sm:$0xff] }
  0x41   :  { %415 = vmatpush.bf16.msrb.mxu0 %v940_v56  ;;  %428 = vmatpush.bf16.msrb.mxu1 %v1004_v59  ;;  %v1311_v56 = vld [vmem:[#allocation5 + $0xb4] sm:$0xf]  ;;  %v1092_v59 = vor.u32 %v1297_v51, %v1089_v52  ;;  %v1057_v51 = vld [vmem:[#allocation5 + $0x8] sm:$0xf0] }
  0x42   :  { %653 = vmatpush.bf16.msrb.mxu3 %v1152_v49  ;;  %v1148_v61 = vor.u32 %v1311_v56, %v1145_v57  ;;  %v1289_v49 = vld [vmem:[#allocation5 + $0x4] sm:$0xf]  ;;  %v1327_v56 = vld [vmem:[%s1631_s7 + $0x30] sm:$0xff]  ;;  %v1334_v57 = vld [vmem:[%s1631_s7 + $0x68] sm:$0xff] }
  0x43   :  { %640 = vmatpush.bf16.msrb.mxu2 %v1088_v58  ;;  %v1060_v52 = vor.u32 %v1289_v49, %v1057_v51  ;;  %v1326_v58 = vld [vmem:[%s1631_s7 + $0x28] sm:$0xff] }
  0x45   :  { %416 = vmatpush.bf16.msrb.mxu0 %v932_v4  ;;  %429 = vmatpush.bf16.msrb.mxu1 %v996_v7  ;;  %v82_v4 = vperm.slane %v80_v0, 0 }
  0x46   :  { %654 = vmatpush.bf16.msrb.mxu3 %v1144_v60  ;;  %v217_v60 = vld [vmem:[%s1628_s4] sm:$0x3] }
  0x47   :  { %641 = vmatpush.bf16.msrb.mxu2 %v1080_v20  ;;  %v219_v2 = vperm.slane %v217_v60, 0  ;;  %v1323_v20 = vld [vmem:[%s1631_s7 + $0x10] sm:$0xff] }
  0x49   :  { %676 = vmatpush.bf16.msra.mxu1 %v1180_v15  ;;  %663 = vmatpush.bf16.msra.mxu0 %v1116_v25  ;;  %v1307_v25 = vld [vmem:[#allocation5 + $0x94] sm:$0xf] }
  0x4a   :  { %655 = vmatpush.bf16.msrb.mxu3 %v1136_v3  ;;  %v1132_v28 = vor.u32 %v1307_v25, %v1129_v27  ;;  %v471_v25 = vld [vmem:[%s1630_s6] sm:$0x3] }
  0x4b   :  { %642 = vmatpush.bf16.msrb.mxu2 %v1072_v32  ;;  %v473_v32 = vperm.slane %v471_v25, 0 }
  0x4d   :  { %677 = vmatpush.bf16.msra.mxu1 %v1172_v23  ;;  %664 = vmatpush.bf16.msra.mxu0 %v1108_v36  ;;  %v1127_v23 = vld [vmem:[#allocation5 + $0x90] sm:$0xf]  ;;  %v1306_v36 = vld [vmem:[#allocation5 + $0x84] sm:$0xf0] }
  0x4e   :  { %v1128_v26 = vor.u32 %v1308_v24, %v1127_v23  ;;  %v1120_v38 = vor.u32 %v1306_v36, %v1119_v35  ;;  %v1321_v23 = vld [vmem:[%s1631_s7] sm:$0xff] }
  0x4f   :  { %643 = vmatpush.bf16.msrb.mxu2 %v1064_v43 }
  0x50   :  { %656 = vmatpush.bf16.msrb.mxu3 %v1128_v26  ;;  %v474_v26 = vperm.slane %v471_v25, 1 }
  0x51   :  { %678 = vmatpush.bf16.msra.mxu1 %v1164_v39  ;;  %665 = vmatpush.bf16.msra.mxu0 %v1100_v47  ;;  %v1121_v39 = vld [vmem:[#allocation5 + $0x88] sm:$0xf0]  ;;  %v1055_v47 = vld [vmem:[#allocation5] sm:$0xf] }
  0x52   :  { %v1124_v40 = vor.u32 %v1305_v37, %v1121_v39  ;;  %v1056_v50 = vor.u32 %v1290_v48, %v1055_v47 }
  0x54   :  { %657 = vmatpush.bf16.msrb.mxu3 %v1120_v38  ;;  %644 = vmatpush.bf16.msrb.mxu2 %v1056_v50 }
  0x55   :  { %679 = vmatpush.bf16.msra.mxu1 %v1156_v53  ;;  %666 = vmatpush.bf16.msra.mxu0 %v1092_v59  ;;  %v1336_v53 = vld [vmem:[%s1631_s7 + $0x78] sm:$0xff]  ;;  %v1333_v59 = vld [vmem:[%s1631_s7 + $0x60] sm:$0xff] }
  0x59   :  { %680 = vmatpush.bf16.msra.mxu1 %v1148_v61  ;;  %667 = vmatpush.bf16.msra.mxu0 %v1084_v22  ;;  %v220_v61 = vperm.slane %v217_v60, 1  ;;  %v1322_v22 = vld [vmem:[%s1631_s7 + $0x8] sm:$0xff] }
  0x5d   :  { %681 = vmatpush.bf16.msra.mxu1 %v1140_v5  ;;  %668 = vmatpush.bf16.msra.mxu0 %v1076_v34 }
  0x61   :  { %682 = vmatpush.bf16.msra.mxu1 %v1132_v28  ;;  %669 = vmatpush.bf16.msra.mxu0 %v1068_v46 }
  0x65   :  { %683 = vmatpush.bf16.msra.mxu1 %v1124_v40  ;;  %670 = vmatpush.bf16.msra.mxu0 %v1060_v52 }
  0xa5   :  { %v164_v7 = vpop.f32.mrf.mxu0  ;;  %v177_v9 = vpop.f32.mrf.mxu1 }
  0xa6   :  { %v165_v8 = vadd.f32 %v164_v7, %v82_v4  ;;  %v178_v10 = vadd.f32 %v177_v9, %v83_v6 }
  0xa8   :  { %v181_v11 = vmax.f32 %v165_v8, 0.0  ;;  %v182_v12 = vmax.f32 %v178_v10, 0.0 }
  0xaa   :  { %v183_v13 = vpack.c.bf16 %v181_v11, %v181_v11  ;;  %v184_v14 = vpack.c.bf16 %v182_v12, %v182_v12 }
  0xac   :  { %391 = vmatmul.bf16.vlgmr.msra.gmra.mxu2 %v183_v13  ;;  %417 = vmatmul.bf16.vlgmr.msrb.gmra.mxu0 %v183_v13 }
  0xad   :  { %404 = vmatmul.bf16.vlgmr.msra.gmra.mxu3 %v184_v14  ;;  %430 = vmatmul.bf16.vlgmr.msrb.gmra.mxu1 %v184_v14  ;;  %v166_v15 = vpop.f32.mrf.mxu0  ;;  %v179_v16 = vpop.f32.mrf.mxu1 }
  0xae   :  { %838 = vmatpush.bf16.msra.mxu3 %v1336_v53  ;;  %825 = vmatpush.bf16.msra.mxu2 %v1328_v54  ;;  %v1332_v15 = vld [vmem:[%s1631_s7 + $0x58] sm:$0xff]  ;;  %v1325_v16 = vld [vmem:[%s1631_s7 + $0x20] sm:$0xff] }
  0xb2   :  { %839 = vmatpush.bf16.msra.mxu3 %v1335_v55  ;;  %826 = vmatpush.bf16.msra.mxu2 %v1327_v56 }
  0xb6   :  { %840 = vmatpush.bf16.msra.mxu3 %v1334_v57  ;;  %827 = vmatpush.bf16.msra.mxu2 %v1326_v58 }
  0xba   :  { %841 = vmatpush.bf16.msra.mxu3 %v1333_v59  ;;  %828 = vmatpush.bf16.msra.mxu2 %v1325_v16 }
  0xbe   :  { %842 = vmatpush.bf16.msra.mxu3 %v1332_v15  ;;  %829 = vmatpush.bf16.msra.mxu2 %v1324_v18 }
  0xc2   :  { %843 = vmatpush.bf16.msra.mxu3 %v1331_v17  ;;  %830 = vmatpush.bf16.msra.mxu2 %v1323_v20 }
  0xc6   :  { %844 = vmatpush.bf16.msra.mxu3 %v1330_v19  ;;  %831 = vmatpush.bf16.msra.mxu2 %v1322_v22 }
  0xca   :  { %845 = vmatpush.bf16.msra.mxu3 %v1329_v21  ;;  %832 = vmatpush.bf16.msra.mxu2 %v1321_v23 }
 0x129   :  { %v418_v62 = vpop.f32.mrf.mxu0 }
 0x12a   :  { %v419_v63 = vadd.f32 %v418_v62, %v220_v61  ;;  %v431_v0 = vpop.f32.mrf.mxu1 }
 0x12c   :  { %v432_v1 = vadd.f32 %v431_v0, %v419_v63 }
 0x12e   :  { %v436_v3 = vmax.f32 %v432_v1, 0.0 }
 0x12f   :  { %v392_v4 = vpop.f32.mrf.mxu2 }
 0x130   :  { %v438_v5 = vpack.c.bf16 %v436_v3, %v436_v3  ;;  %v393_v6 = vadd.f32 %v392_v4, %v219_v2  ;;  %v405_v7 = vpop.f32.mrf.mxu3 }
 0x131   :  { %v420_v8 = vpop.f32.mrf.mxu0 }
 0x132   :  { %v406_v9 = vadd.f32 %v405_v7, %v393_v6  ;;  %v433_v10 = vpop.f32.mrf.mxu1  ;;  %658 = vmatmul.bf16.vlgmr.msrb.gmra.mxu3 %v438_v5  ;;  %684 = vmatmul.bf16.vlgmr.msra.gmra.mxu1 %v438_v5 }
 0x134   :  { %v435_v11 = vmax.f32 %v406_v9, 0.0 }
 0x136   :  { %v437_v12 = vpack.c.bf16 %v435_v11, %v435_v11 }
 0x137   :  { %v394_v13 = vpop.f32.mrf.mxu2 }
 0x138   :  { %v407_v14 = vpop.f32.mrf.mxu3  ;;  %645 = vmatmul.bf16.vlgmr.msrb.gmra.mxu2 %v437_v12  ;;  %671 = vmatmul.bf16.vlgmr.msra.gmra.mxu0 %v437_v12 }
 0x1af   :  { %v685_v24 = vpop.f32.mrf.mxu1 }
 0x1b5   :  { %v659_v27 = vpop.f32.mrf.mxu3  ;;  %v672_v28 = vpop.f32.mrf.mxu0 }
 0x1b6   :  { %v673_v29 = vadd.f32 %v672_v28, %v474_v26 }
 0x1b7   :  { %v687_v30 = vpop.f32.mrf.mxu1 }
 0x1b8   :  { %v686_v31 = vadd.f32 %v685_v24, %v673_v29 }
 0x1ba   :  { %v690_v33 = vmax.f32 %v686_v31, 0.0 }
 0x1bb   :  { %v646_v34 = vpop.f32.mrf.mxu2 }
 0x1bc   :  { %v692_v35 = vpack.c.bf16 %v690_v33, %v690_v33  ;;  %v647_v36 = vadd.f32 %v646_v34, %v473_v32 }
 0x1bd   :  { %v661_v37 = vpop.f32.mrf.mxu3  ;;  %v674_v38 = vpop.f32.mrf.mxu0 }
 0x1be   :  { %v660_v39 = vadd.f32 %v659_v27, %v647_v36  ;;  %846 = vmatmul.bf16.vlgmr.msra.gmra.mxu3 %v692_v35 }
 0x1c0   :  { %v689_v40 = vmax.f32 %v660_v39, 0.0 }
 0x1c2   :  { %v691_v41 = vpack.c.bf16 %v689_v40, %v689_v40 }
 0x1c3   :  { %v648_v42 = vpop.f32.mrf.mxu2 }
 0x1c4   :  { %833 = vmatmul.bf16.vlgmr.msra.gmra.mxu2 %v691_v41 }
 0x241   :  { %v847_v43 = vpop.f32.mrf.mxu3 }
 0x247   :  { %v834_v45 = vpop.f32.mrf.mxu2 }
 0x248   :  { %v835_v46 = vadd.f32 %v1342_v44, %v834_v45 }
 0x249   :  { %v849_v47 = vpop.f32.mrf.mxu3 }
 0x24a   :  { %v848_v48 = vadd.f32 %v847_v43, %v835_v46 }
 0x24c   :  { %v851_v49 = vmul.f32 0.5, %v848_v48 }
 0x24e   :  { %1343 = vtanh.f32 %v851_v49 }
 0x24f   :  { %v836_v50 = vpop.f32.mrf.mxu2 }
 0x254   :  { %v1344_v51 = vpop.eup %1343 }
 0x255   :  { %v853_v52 = vadd.f32 1.0, %v1344_v51 }
 0x257   :  { %v854_v53 = vmul.f32 0.5, %v853_v52 }
 0x259   :  { %856 = vst.msk [vmem:[#allocation7] sm:$0xff] %vm855_vm2, %v854_v53 }
 0x25a   :  { %867 = dma.vmem_to_hbm [thread:$0]  %s863_s11, 128, %s865_s14, [#allocation4]  }
 0x25b   :  { %1421 = dma.done.wait [#allocation4], 128  }
 0x25c   :  { %1422 = vsyncadd [#allocation4], 4294967168 }
 0x25d   :  { %872 = vsyncpa [#allocation3], 1 }
 0x25e   :  { %873 = vsyncpa [#allocation6], 1 }
 0x25f   :  { %874 = vsyncpa [#allocation4], 1 }

</bundles_post_ra>
